<compile_context>
chip_gen: v6e
topology: v6e:2x2x1
jax: 0.10.0
libtpu: 0.0.40
codegen_flags: <defaults>
</compile_context>

<pallas_src>
import functools

import jax
import jax.numpy as jnp
from jax.experimental import pallas as pl
from jax.experimental.pallas import tpu as pltpu


def _round_up(n, m):
    return ((n + m - 1) // m) * m


def _slab_offsets(d, kp):
    """Row offsets inside the packed parameter slab (all 8-aligned)."""
    off_w1 = 0
    off_w2 = d
    off_w3 = d + kp
    off_b1 = d + 2 * kp
    off_b2 = off_b1 + 8
    off_b3 = off_b2 + 8
    rows = off_b3 + 8
    return off_w1, off_w2, off_w3, off_b1, off_b2, off_b3, rows


def pack_params(w1, b1, w2, b2, w3, b3, *, d, k, kp=128):
    """Pack all weights/biases into one zero-padded (rows, d) f32 slab.

    Zero padding of the hidden dim k -> kp is exact: padded lanes of the hidden
    activations are tanh(0) = 0 and the corresponding W3 rows are zero.
    """
    off_w1, off_w2, off_w3, off_b1, off_b2, off_b3, rows = _slab_offsets(d, kp)
    slab = jnp.zeros((rows, d), jnp.float32)
    slab = slab.at[off_w1:off_w1 + d, 0:k].set(w1)   # (d, k)  fc_enc
    slab = slab.at[off_w2:off_w2 + k, 0:k].set(w2)   # (k, k)  fc_lv
    slab = slab.at[off_w3:off_w3 + k, 0:d].set(w3)   # (k, d)  fc_dec
    slab = slab.at[off_b1, 0:k].set(b1)
    slab = slab.at[off_b2, 0:k].set(b2)
    slab = slab.at[off_b3, 0:d].set(b3)
    return slab


def autoencoder_kernel(x_ref, p_ref, o_ref, *, d, kp, off_b1, off_b2, off_b3):
    # Static slices of the packed parameter slab (zero runtime cost).
    w1 = p_ref[pl.ds(0, d), pl.ds(0, kp)]          # (d, kp)
    w2 = p_ref[pl.ds(d, kp), pl.ds(0, kp)]         # (kp, kp)
    w3 = p_ref[pl.ds(d + kp, kp), :]               # (kp, d)
    b1 = p_ref[pl.ds(off_b1, 1), pl.ds(0, kp)]     # (1, kp)
    b2 = p_ref[pl.ds(off_b2, 1), pl.ds(0, kp)]     # (1, kp)
    b3 = p_ref[pl.ds(off_b3, 1), :]                # (1, d)

    # Streams may be bf16 (halved HBM bytes); all arithmetic in f32 so the
    # bias-add / tanh path is exact on v5e (no bf16 VPU/EUP there).
    x = x_ref[...].astype(jnp.float32)
    h = jnp.tanh(jnp.dot(x, w1, preferred_element_type=jnp.float32) + b1)
    h = jnp.tanh(jnp.dot(h, w2, preferred_element_type=jnp.float32) + b2)
    y = jnp.dot(h, w3, preferred_element_type=jnp.float32) + b3
    o_ref[...] = y.astype(o_ref.dtype)


def autoencoder_forward(x, param_slab, *, d, kp=128, block_b=1024, out_dtype=None):
    """Batched forward: grid over batch tiles, params stay VMEM-resident.

    Output dtype follows the input stream dtype unless overridden.
    """
    B, d_in = x.shape
    assert d_in == d
    out_dtype = x.dtype if out_dtype is None else out_dtype
    rows = param_slab.shape[0]
    _, _, _, off_b1, off_b2, off_b3, rows_expected = _slab_offsets(d, kp)
    assert rows == rows_expected

    # --- batch tiling (no host-side pad/slice in the common cases) ----------
    padded = False
    if B % 8 != 0 and B > block_b:
        # Rare path: large, non-8-aligned batch -> pad a handful of rows (<=7).
        x = jnp.pad(x, ((0, (-B) % 8), (0, 0)))
        padded = True
    Bp = x.shape[0]

    if Bp % 8 != 0:
        # Tiny / non-aligned batch: one block equal to the full array dims.
        tb = Bp
    else:
        # Aim for >=2 grid steps so both v7x TensorCores stream ("parallel"
        # axis), capped by block_b; ragged last tile handled by the cdiv grid.
        tb = min(block_b, max(8, _round_up(-(-Bp // 2), 8)))

    grid = (pl.cdiv(Bp, tb),)

    kernel = functools.partial(
        autoencoder_kernel, d=d, kp=kp, off_b1=off_b1, off_b2=off_b2, off_b3=off_b3
    )

    out = pl.pallas_call(
        kernel,
        out_shape=jax.ShapeDtypeStruct((Bp, d), out_dtype),
        grid=grid,
        in_specs=[
            # Activations streamed over the batch axis.
            pl.BlockSpec((tb, d), lambda i: (i, 0)),
            # Packed params: constant index_map -> fetched once, VMEM-resident.
            pl.BlockSpec((rows, d), lambda i: (0, 0)),
        ],
        out_specs=pl.BlockSpec((tb, d), lambda i: (i, 0)),
        compiler_params=pltpu.CompilerParams(
            dimension_semantics=("parallel",),
        ),
    )(x, param_slab)
    return out[:B] if padded else out


def init_linear(key, fan_in, fan_out, dtype=jnp.float32):
    """PyTorch-style uniform(-1/sqrt(fan_in), 1/sqrt(fan_in)) init.

    Weight returned in (in, out) layout (transposed vs PyTorch storage),
    bias as a 1-D (out,) vector.
    """
    kw, kb = jax.random.split(key)
    bound = 1.0 / jnp.sqrt(jnp.asarray(fan_in, dtype))
    w = jax.random.uniform(kw, (fan_in, fan_out), dtype, minval=-bound, maxval=bound)
    b = jax.random.uniform(kb, (fan_out,), dtype, minval=-bound, maxval=bound)
    return w, b


def reference_forward(x, w1, b1, w2, b2, w3, b3):
    h = jnp.tanh(x @ w1 + b1)
    h = jnp.tanh(h @ w2 + b2)
    return h @ w3 + b3


if __name__ == "__main__":
    X_DIM, Y_DIM, K = 16, 16, 32
    D = X_DIM * Y_DIM          # 256
    KP = 128                   # lane-dense padded hidden dim
    B = 2

    key = jax.random.PRNGKey(0)
    k_in, k1, k2, k3, k_big = jax.random.split(key, 5)

    w1, b1 = init_linear(k1, D, K)   # fc_enc
    w2, b2 = init_linear(k2, K, K)   # fc_lv
    w3, b3 = init_linear(k3, K, D)   # fc_dec
    slab = pack_params(w1, b1, w2, b2, w3, b3, d=D, k=K, kp=KP)

    # --- module-sized check: B=2, f32 streams, single full-array block -------
    x = jax.random.normal(k_in, (B, D), jnp.float32)
    out = jax.block_until_ready(autoencoder_forward(x, slab, d=D, kp=KP))
    ref = reference_forward(x, w1, b1, w2, b2, w3, b3)
    assert out.shape == (B, D)
    assert jnp.allclose(out, ref, atol=1e-5, rtol=1e-5), "mismatch vs JAX reference (B=2, f32)"

    # --- larger batch, f32 streams: >=2 parallel grid steps, no pad/slice ----
    B_BIG = 1024
    x_big = jax.random.normal(k_big, (B_BIG, D), jnp.float32)
    out_big = jax.block_until_ready(
        autoencoder_forward(x_big, slab, d=D, kp=KP, block_b=1024)
    )
    ref_big = reference_forward(x_big, w1, b1, w2, b2, w3, b3)
    assert out_big.shape == (B_BIG, D)
    assert jnp.allclose(out_big, ref_big, atol=1e-5, rtol=1e-5), \
        "mismatch vs JAX reference (B=1024, f32)"

    # --- bf16-streamed activations (halved HBM traffic), f32 math inside -----
    x_bf = x_big.astype(jnp.bfloat16)
    out_bf = jax.block_until_ready(
        autoencoder_forward(x_bf, slab, d=D, kp=KP, block_b=1024)
    )
    assert out_bf.shape == (B_BIG, D)
    assert out_bf.dtype == jnp.bfloat16
    ref_bf = reference_forward(x_bf.astype(jnp.float32), w1, b1, w2, b2, w3, b3)
    max_err = float(jnp.max(jnp.abs(out_bf.astype(jnp.float32) - ref_bf)))
    assert max_err < 5e-2, f"bf16-stream mismatch vs JAX reference, max_err={max_err}"

    print("KERNEL_OK")
</pallas_src>

<mosaic_0001>
module attributes {stable_mosaic.version = 11 : i64} {
  func.func @autoencoder_kernel(%arg0: i32, %arg1: memref<2x256xf32, #tpu.memory_space<vmem>>, %arg2: memref<536x256xf32, #tpu.memory_space<vmem>>, %arg3: memref<2x256xf32, #tpu.memory_space<vmem>>) attributes {dimension_semantics = [#tpu.dimension_semantics<parallel>], iteration_bounds = array<i64: 1>, scalar_prefetch = 0 : i64, scratch_operands = 0 : i64, tpu.core_type = #tpu.core_type<tc>, window_params = [{transform_indices = @transform_0, window_bounds = array<i64: 2, 256>}, {pipeline_mode = #tpu.pipeline_mode<synchronous>, transform_indices = @transform_1, window_bounds = array<i64: 536, 256>}, {transform_indices = @transform_2, window_bounds = array<i64: 2, 256>}]} {
    %c0 = arith.constant 0 : index
    %c0_0 = arith.constant 0 : index
    %0 = vector.load %arg2[%c0, %c0_0] : memref<536x256xf32, #tpu.memory_space<vmem>>, vector<256x128xf32>
    %c256 = arith.constant 256 : index
    %c0_1 = arith.constant 0 : index
    %1 = vector.load %arg2[%c256, %c0_1] : memref<536x256xf32, #tpu.memory_space<vmem>>, vector<128x128xf32>
    %c384 = arith.constant 384 : index
    %c0_2 = arith.constant 0 : index
    %2 = vector.load %arg2[%c384, %c0_2] : memref<536x256xf32, #tpu.memory_space<vmem>>, vector<128x256xf32>
    %c512 = arith.constant 512 : index
    %c0_3 = arith.constant 0 : index
    %3 = vector.load %arg2[%c512, %c0_3] : memref<536x256xf32, #tpu.memory_space<vmem>>, vector<1x128xf32>
    %c520 = arith.constant 520 : index
    %c0_4 = arith.constant 0 : index
    %4 = vector.load %arg2[%c520, %c0_4] : memref<536x256xf32, #tpu.memory_space<vmem>>, vector<1x128xf32>
    %c528 = arith.constant 528 : index
    %c0_5 = arith.constant 0 : index
    %5 = vector.load %arg2[%c528, %c0_5] : memref<536x256xf32, #tpu.memory_space<vmem>>, vector<1x256xf32>
    %c0_6 = arith.constant 0 : index
    %c0_7 = arith.constant 0 : index
    %6 = vector.load %arg1[%c0_6, %c0_7] : memref<2x256xf32, #tpu.memory_space<vmem>>, vector<2x256xf32>
    %cst = arith.constant dense<0.000000e+00> : vector<2x128xf32>
    %7 = tpu.matmul %6, %0, %cst {dimension_numbers = #tpu.dot_dimension_numbers<[1], [0], [0], [1], [0, 0, 1, 1], [], []>} : vector<2x256xf32>, vector<256x128xf32>, vector<2x128xf32> -> vector<2x128xf32>
    %8 = vector.broadcast %3 : vector<1x128xf32> to vector<2x128xf32>
    %9 = arith.addf %7, %8 : vector<2x128xf32>
    %10 = math.tanh %9 : vector<2x128xf32>
    %cst_8 = arith.constant dense<0.000000e+00> : vector<2x128xf32>
    %11 = tpu.matmul %10, %1, %cst_8 {dimension_numbers = #tpu.dot_dimension_numbers<[1], [0], [0], [1], [0, 0, 1, 1], [], []>} : vector<2x128xf32>, vector<128x128xf32>, vector<2x128xf32> -> vector<2x128xf32>
    %12 = vector.broadcast %4 : vector<1x128xf32> to vector<2x128xf32>
    %13 = arith.addf %11, %12 : vector<2x128xf32>
    %14 = math.tanh %13 : vector<2x128xf32>
    %cst_9 = arith.constant dense<0.000000e+00> : vector<2x256xf32>
    %15 = tpu.matmul %14, %2, %cst_9 {dimension_numbers = #tpu.dot_dimension_numbers<[1], [0], [0], [1], [0, 0, 1, 1], [], []>} : vector<2x128xf32>, vector<128x256xf32>, vector<2x256xf32> -> vector<2x256xf32>
    %16 = vector.broadcast %5 : vector<1x256xf32> to vector<2x256xf32>
    %17 = arith.addf %15, %16 : vector<2x256xf32>
    %c0_10 = arith.constant 0 : index
    %c0_11 = arith.constant 0 : index
    %18 = vector.load %arg3[%c0_10, %c0_11] : memref<2x256xf32, #tpu.memory_space<vmem>>, vector<2x256xf32>
    tpu.vector_store %arg3[%c0_10, %c0_11], %17 {strides = array<i32>} : memref<2x256xf32, #tpu.memory_space<vmem>>, vector<2x256xf32>,
    return
  }
  func.func @transform_0(%arg0: i32) -> (i32, i32) {
    %c0_i32 = arith.constant 0 : i32
    %c0_i32_0 = arith.constant 0 : i32
    return %arg0, %c0_i32 : i32, i32
  }
  func.func @transform_1(%arg0: i32) -> (i32, i32) {
    %c0_i32 = arith.constant 0 : i32
    %c0_i32_0 = arith.constant 0 : i32
    %c0_i32_1 = arith.constant 0 : i32
    return %c0_i32, %c0_i32_0 : i32, i32
  }
  func.func @transform_2(%arg0: i32) -> (i32, i32) {
    %c0_i32 = arith.constant 0 : i32
    %c0_i32_0 = arith.constant 0 : i32
    return %arg0, %c0_i32 : i32, i32
  }
}

</mosaic_0001>

<bundles_post_ra>
// kernel: tpu_custom_call.1
= control target key start
LH: loop header
LB: loop body
LE: loop exit
PB: predicated region body
PF: predicated region fallthrough
CT: control target
= control target key end

     0   :  { %7 = vsyncpa [#allocation3], 0  ;;  %s601_s0 = inlined_call_operand.hbm [shape: f32[2,256], index: 0, kind: input, shape index: {}]   ;;  %s602_s1 = inlined_call_operand.hbm [shape: f32[536,256], index: 1, kind: input, shape index: {}]   ;;  %s603_s2 = inlined_call_operand.hbm [shape: f32[2,256], index: 2, kind: output, shape index: {}]  }
   0x1   :  { %8 = vsyncpa [#allocation6], 0 }
   0x2   :  { %9 = vsyncpa [#allocation4], 0  ;;  %s552_s9 = smov [#allocation2]   ;;  %s553_s11 = smov [#allocation5]  }
   0x3   :  { %s16_s10 = sshll.u32 %s552_s9, 4  ;;  %s25_s12 = sshll.u32 %s553_s11, 4  ;;  %s17_s10 = int_to_ptr.vmem [resolvable:$true] %s16_s10  ;;  %s26_s12 = int_to_ptr.vmem [resolvable:$true] %s25_s12 }
   0x4   :  { %s494_s13 = scalar_lea.vmem %s17_s10, 64  ;;  %p499_p1 = scmp.lt.s32.totalorder %s17_s10, %s17_s10 }
   0x5   :  { %p495_p0 = scmp.ne.s32.totalorder %s17_s10, %s494_s13  ;;  %p500_p2 = scmp.lt.s32.totalorder %s494_s13, %s494_s13 }
   0x7   :  { %p501_p3 = por %p500_p2, %p499_p1 }
   0x9   :  { %p502_p4 = pnand %p501_p3, %p495_p0 }
   0xb   :  { %505 = shalt.err (!%p502_p4)
}
   0xc   :  { %19 = dma.hbm_to_vmem [thread:$0]  %s601_s0, 64, %s17_s10, [#allocation3]  }
   0xd   :  { %s514_s16 = scalar_lea.vmem %s26_s12, 17152  ;;  %p519_p6 = scmp.lt.s32.totalorder %s26_s12, %s26_s12 }
   0xe   :  { %p515_p5 = scmp.ne.s32.totalorder %s26_s12, %s514_s16  ;;  %p520_p7 = scmp.lt.s32.totalorder %s514_s16, %s514_s16 }
  0x10   :  { %p521_p8 = por %p520_p7, %p519_p6 }
  0x12   :  { %p522_p9 = pnand %p521_p8, %p515_p5 }
  0x14   :  { %525 = shalt.err (!%p522_p9)
}
  0x15   :  { %s554_s17 = smov 256   ;;  %s555_s18 = smov 16  }
  0x16   :  { %31 = dma.hbm_to_vmem [thread:$0]  %s602_s1, 17152, %s26_s12, [#allocation6], %s554_s17, %s554_s17, %s555_s18  }
  0x17   :  { %546 = dma.done.wait [#allocation3], 64  }
  0x18   :  { %547 = vsyncadd [#allocation3], 4294967232 }
  0x19   :  { %548 = dma.done.wait [#allocation6], 17152  }
  0x1a   :  { %549 = vsyncadd [#allocation6], 4294950144  ;;  %v556_v0 = vmov 0.0   ;;  %v69_v1 = vld [vmem:[#allocation5 + $0x1f0] sm:$0xff]  ;;  %v68_v3 = vld [vmem:[#allocation5 + $0x1e0] sm:$0xff]  ;;  %vm557_vm0 = vmmov 0  }
  0x1b   :  { %440 = vmatprep.subr.mxu1 %v556_v0  ;;  %v53_v2 = vld [vmem:[#allocation5 + $0xf0] sm:$0xff]  ;;  %388 = vmatprep.subr.mxu0 %v69_v1  ;;  %v52_v4 = vld [vmem:[#allocation5 + $0xe0] sm:$0xff]  ;;  %v386_v14 = vld.sshfl [vmem:[#allocation2] sm:$0x33 pattern:$0x76325410] }
  0x1c   :  { %389 = vmatpush3.msra.mxu0 %v53_v2  ;;  %v67_v5 = vld [vmem:[#allocation5 + $0x1d0] sm:$0xff]  ;;  %v66_v7 = vld [vmem:[#allocation5 + $0x1c0] sm:$0xff]  ;;  %v131_v16 = vcombine.high %v386_v14, %v386_v14  ;;  %472 = vmatprep.mubr.msk.f32.mxu1 %vm557_vm0, %v556_v0  ;;  %v117_v51 = vld [vmem:[#allocation5 + $0x3f8] sm:$0xff]  ;;  %s558_s0 = smov [#allocation7]  }
  0x1d   :  { %390 = vmatprep.subr.mxu0 %v68_v3  ;;  %v51_v6 = vld [vmem:[#allocation5 + $0xd0] sm:$0xff]  ;;  %v50_v8 = vld [vmem:[#allocation5 + $0xc0] sm:$0xff]  ;;  %v115_v53 = vld [vmem:[#allocation5 + $0x3e8] sm:$0xff]  ;;  %s376_s1 = sshll.u32 %s558_s0, 4  ;;  %s377_s1 = int_to_ptr.vmem [resolvable:$true] %s376_s1 }
  0x1e   :  { %391 = vmatpush3.msra.mxu0 %v52_v4  ;;  %v65_v9 = vld [vmem:[#allocation5 + $0x1b0] sm:$0xff]  ;;  %v64_v11 = vld [vmem:[#allocation5 + $0x1a0] sm:$0xff]  ;;  %198 = vmatprep.mubr.f32.mxu0 %v131_v16  ;;  %v113_v55 = vld [vmem:[#allocation5 + $0x3d8] sm:$0xff]  ;;  %s526_s21 = scalar_lea.vmem %s377_s1, 64  ;;  %p531_p11 = scmp.lt.s32.totalorder %s377_s1, %s377_s1 }
  0x1f   :  { %392 = vmatprep.subr.mxu0 %v67_v5  ;;  %v49_v10 = vld [vmem:[#allocation5 + $0xb0] sm:$0xff]  ;;  %v48_v12 = vld [vmem:[#allocation5 + $0xa0] sm:$0xff]  ;;  %v111_v57 = vld [vmem:[#allocation5 + $0x3c8] sm:$0xff]  ;;  %p527_p10 = scmp.ne.s32.totalorder %s377_s1, %s526_s21  ;;  %p532_p12 = scmp.lt.s32.totalorder %s526_s21, %s526_s21 }
  0x20   :  { %393 = vmatpush3.msra.mxu0 %v51_v6  ;;  %v63_v13 = vld [vmem:[#allocation5 + $0x190] sm:$0xff]  ;;  %v62_v18 = vld [vmem:[#allocation5 + $0x180] sm:$0xff]  ;;  %v109_v59 = vld [vmem:[#allocation5 + $0x3b8] sm:$0xff] }
  0x21   :  { %394 = vmatprep.subr.mxu0 %v66_v7  ;;  %v47_v15 = vld [vmem:[#allocation5 + $0x90] sm:$0xff]  ;;  %v84_v19 = vld [vmem:[#allocation5 + $0x2e0] sm:$0xff]  ;;  %v107_v61 = vld [vmem:[#allocation5 + $0x3a8] sm:$0xff]  ;;  %p533_p13 = por %p532_p12, %p531_p11 }
  0x22   :  { %395 = vmatpush3.msra.mxu0 %v50_v8  ;;  %v85_v17 = vld [vmem:[#allocation5 + $0x2f0] sm:$0xff]  ;;  %v46_v20 = vld [vmem:[#allocation5 + $0x80] sm:$0xff]  ;;  %v105_v63 = vld [vmem:[#allocation5 + $0x398] sm:$0xff] }
  0x23   :  { %396 = vmatprep.subr.mxu0 %v65_v9  ;;  %441 = vmatpush3.msra.mxu1 %v85_v17  ;;  %v61_v21 = vld [vmem:[#allocation5 + $0x170] sm:$0xff]  ;;  %v60_v24 = vld [vmem:[#allocation5 + $0x160] sm:$0xff]  ;;  %v103_v1 = vld [vmem:[#allocation5 + $0x388] sm:$0xff]  ;;  %p534_p0 = pnand %p533_p13, %p527_p10 }
  0x24   :  { %397 = vmatpush3.msra.mxu0 %v49_v10  ;;  %442 = vmatprep.subr.mxu1 %v556_v0  ;;  %v83_v22 = vld [vmem:[#allocation5 + $0x2d0] sm:$0xff]  ;;  %v82_v25 = vld [vmem:[#allocation5 + $0x2c0] sm:$0xff]  ;;  %v101_v9 = vld [vmem:[#allocation5 + $0x378] sm:$0xff] }
  0x25   :  { %398 = vmatprep.subr.mxu0 %v64_v11  ;;  %v45_v23 = vld [vmem:[#allocation5 + $0x70] sm:$0xff]  ;;  %443 = vmatpush3.msra.mxu1 %v84_v19  ;;  %v44_v26 = vld [vmem:[#allocation5 + $0x60] sm:$0xff]  ;;  %v99_v11 = vld [vmem:[#allocation5 + $0x368] sm:$0xff] }
  0x26   :  { %399 = vmatpush3.msra.mxu0 %v48_v12  ;;  %444 = vmatprep.subr.mxu1 %v556_v0  ;;  %v59_v27 = vld [vmem:[#allocation5 + $0x150] sm:$0xff]  ;;  %v58_v30 = vld [vmem:[#allocation5 + $0x140] sm:$0xff]  ;;  %v93_v17 = vld [vmem:[#allocation5 + $0x338] sm:$0xff] }
  0x27   :  { %400 = vmatprep.subr.mxu0 %v63_v13  ;;  %445 = vmatpush3.msra.mxu1 %v83_v22  ;;  %v81_v28 = vld [vmem:[#allocation5 + $0x2b0] sm:$0xff]  ;;  %v42_v31 = vld [vmem:[#allocation5 + $0x40] sm:$0xff]  ;;  %v97_v13 = vld [vmem:[#allocation5 + $0x358] sm:$0xff] }
  0x28   :  { %401 = vmatpush3.msra.mxu0 %v47_v15  ;;  %446 = vmatprep.subr.mxu1 %v556_v0  ;;  %v43_v29 = vld [vmem:[#allocation5 + $0x50] sm:$0xff]  ;;  %v56_v34 = vld [vmem:[#allocation5 + $0x120] sm:$0xff]  ;;  %v95_v15 = vld [vmem:[#allocation5 + $0x348] sm:$0xff] }
  0x29   :  { %402 = vmatprep.subr.mxu0 %v62_v18  ;;  %447 = vmatpush3.msra.mxu1 %v82_v25  ;;  %v57_v32 = vld [vmem:[#allocation5 + $0x130] sm:$0xff]  ;;  %v40_v35 = vld [vmem:[#allocation5 + $0x20] sm:$0xff]  ;;  %v91_v19 = vld [vmem:[#allocation5 + $0x328] sm:$0xff] }
  0x2a   :  { %403 = vmatpush3.msra.mxu0 %v46_v20  ;;  %448 = vmatprep.subr.mxu1 %v556_v0  ;;  %v41_v33 = vld [vmem:[#allocation5 + $0x30] sm:$0xff]  ;;  %v54_v38 = vld [vmem:[#allocation5 + $0x100] sm:$0xff] }
  0x2b   :  { %404 = vmatprep.subr.mxu0 %v61_v21  ;;  %449 = vmatpush3.msra.mxu1 %v81_v28  ;;  %v55_v36 = vld [vmem:[#allocation5 + $0x110] sm:$0xff]  ;;  %v38_v39 = vld [vmem:[#allocation5] sm:$0xff]  ;;  %v89_v21 = vld [vmem:[#allocation5 + $0x318] sm:$0xff] }
  0x2c   :  { %405 = vmatpush3.msra.mxu0 %v45_v23  ;;  %450 = vmatprep.subr.mxu1 %v556_v0  ;;  %v39_v37 = vld [vmem:[#allocation5 + $0x10] sm:$0xff]  ;;  %v80_v40 = vld [vmem:[#allocation5 + $0x2a0] sm:$0xff]  ;;  %v87_v23 = vld [vmem:[#allocation5 + $0x308] sm:$0xff] }
  0x2d   :  { %406 = vmatprep.subr.mxu0 %v60_v24  ;;  %451 = vmatpush3.msra.mxu1 %v80_v40  ;;  %v79_v41 = vld [vmem:[#allocation5 + $0x290] sm:$0xff]  ;;  %v78_v42 = vld [vmem:[#allocation5 + $0x280] sm:$0xff] }
  0x2e   :  { %407 = vmatpush3.msra.mxu0 %v44_v26  ;;  %452 = vmatprep.subr.mxu1 %v556_v0  ;;  %v77_v43 = vld [vmem:[#allocation5 + $0x270] sm:$0xff]  ;;  %v76_v44 = vld [vmem:[#allocation5 + $0x260] sm:$0xff] }
  0x2f   :  { %408 = vmatprep.subr.mxu0 %v59_v27  ;;  %453 = vmatpush3.msra.mxu1 %v79_v41  ;;  %v75_v45 = vld [vmem:[#allocation5 + $0x250] sm:$0xff]  ;;  %v74_v46 = vld [vmem:[#allocation5 + $0x240] sm:$0xff] }
  0x30   :  { %409 = vmatpush3.msra.mxu0 %v43_v29  ;;  %454 = vmatprep.subr.mxu1 %v556_v0  ;;  %v73_v47 = vld [vmem:[#allocation5 + $0x230] sm:$0xff]  ;;  %v72_v48 = vld [vmem:[#allocation5 + $0x220] sm:$0xff] }
  0x31   :  { %410 = vmatprep.subr.mxu0 %v58_v30  ;;  %455 = vmatpush3.msra.mxu1 %v78_v42  ;;  %v71_v49 = vld [vmem:[#allocation5 + $0x210] sm:$0xff]  ;;  %v70_v50 = vld [vmem:[#allocation5 + $0x200] sm:$0xff]  ;;  %v277_v30 = vlaneseq }
  0x32   :  { %411 = vmatpush3.msra.mxu0 %v42_v31  ;;  %456 = vmatprep.subr.mxu1 %v556_v0  ;;  %v116_v52 = vld [vmem:[#allocation5 + $0x3f0] sm:$0xff]  ;;  %v114_v54 = vld [vmem:[#allocation5 + $0x3e0] sm:$0xff] }
  0x33   :  { %412 = vmatprep.subr.mxu0 %v57_v32  ;;  %457 = vmatpush3.msra.mxu1 %v77_v43  ;;  %v112_v56 = vld [vmem:[#allocation5 + $0x3d0] sm:$0xff]  ;;  %v110_v58 = vld [vmem:[#allocation5 + $0x3c0] sm:$0xff]  ;;  %v278_v31 = vshrl.u32 %v277_v30, 7 }
  0x34   :  { %413 = vmatpush3.msra.mxu0 %v41_v33  ;;  %458 = vmatprep.subr.mxu1 %v556_v0  ;;  %v108_v60 = vld [vmem:[#allocation5 + $0x3b0] sm:$0xff]  ;;  %v106_v62 = vld [vmem:[#allocation5 + $0x3a0] sm:$0xff] }
  0x35   :  { %414 = vmatprep.subr.mxu0 %v56_v34  ;;  %459 = vmatpush3.msra.mxu1 %v76_v44  ;;  %v118_v3 = vld [vmem:[#allocation5 + $0x400] ss:$0 sm:$0xff]  ;;  %v100_v10 = vld [vmem:[#allocation5 + $0x370] sm:$0xff]  ;;  %v279_v32 = vsub.s32 0, %v278_v31  ;;  %v283_v33 = vsub.s32 1, %v278_v31 }
  0x36   :  { %415 = vmatpush3.msra.mxu0 %v40_v35  ;;  %460 = vmatprep.subr.mxu1 %v556_v0  ;;  %v102_v8 = vld [vmem:[#allocation5 + $0x380] sm:$0xff]  ;;  %v92_v18 = vld [vmem:[#allocation5 + $0x330] sm:$0xff] }
  0x37   :  { %416 = vmatprep.subr.mxu0 %v55_v36  ;;  %461 = vmatpush3.msra.mxu1 %v75_v45  ;;  %v98_v12 = vld [vmem:[#allocation5 + $0x360] sm:$0xff]  ;;  %v88_v22 = vld [vmem:[#allocation5 + $0x310] sm:$0xff] }
  0x38   :  { %417 = vmatpush3.msra.mxu0 %v39_v37  ;;  %462 = vmatprep.subr.mxu1 %v556_v0  ;;  %v94_v16 = vld [vmem:[#allocation5 + $0x340] sm:$0xff]  ;;  %v119_v25 = vld [vmem:[#allocation5 + $0x410] ss:$0 sm:$0xff] }
  0x39   :  { %418 = vmatprep.subr.mxu0 %v54_v38  ;;  %463 = vmatpush3.msra.mxu1 %v74_v46  ;;  %v90_v20 = vld [vmem:[#allocation5 + $0x320] sm:$0xff] }
  0x3a   :  { %419 = vmatpush3.msra.mxu0 %v38_v39  ;;  %464 = vmatprep.subr.mxu1 %v556_v0  ;;  %v86_v24 = vld [vmem:[#allocation5 + $0x300] sm:$0xff] }
  0x3b   :  { %199 = vmatmul.mubr.f32.vlgmr.msra.gmra.mxu0 %v386_v14  ;;  %465 = vmatpush3.msra.mxu1 %v73_v47  ;;  %v96_v14 = vld [vmem:[#allocation5 + $0x350] sm:$0xff]  ;;  %v121_v34 = vld [vmem:[#allocation5 + $0x420] ss:$8 sm:$0x3] }
  0x3c   :  { %351 = vmatprep.mubr.f32.mxu0 %v556_v0  ;;  %466 = vmatprep.subr.mxu1 %v556_v0  ;;  %v280_v35 = vrot.slane %v121_v34, %v279_v32  ;;  %v284_v36 = vrot.slane %v121_v34, %v283_v33 }
  0x3d   :  { %467 = vmatpush3.msra.mxu1 %v72_v48  ;;  %287 = vmatprep.subr.mxu0 %v117_v51 }
  0x3e   :  { %468 = vmatprep.subr.mxu1 %v556_v0  ;;  %288 = vmatpush1.msra.mxu0 %v116_v52 }
  0x3f   :  { %469 = vmatpush3.msra.mxu1 %v71_v49  ;;  %289 = vmatprep.subr.mxu0 %v115_v53 }
  0x40   :  { %470 = vmatprep.subr.mxu1 %v556_v0  ;;  %290 = vmatpush1.msra.mxu0 %v114_v54  ;;  %v104_v0 = vld [vmem:[#allocation5 + $0x390] sm:$0xff] }
  0x41   :  { %471 = vmatpush3.msra.mxu1 %v70_v50  ;;  %291 = vmatprep.subr.mxu0 %v113_v55 }
  0x42   :  { %292 = vmatpush1.msra.mxu0 %v112_v56 }
  0x43   :  { %293 = vmatprep.subr.mxu0 %v111_v57 }
  0x44   :  { %294 = vmatpush1.msra.mxu0 %v110_v58 }
  0x45   :  { %295 = vmatprep.subr.mxu0 %v109_v59 }
  0x46   :  { %296 = vmatpush1.msra.mxu0 %v108_v60 }
  0x47   :  { %297 = vmatprep.subr.mxu0 %v107_v61 }
  0x48   :  { %298 = vmatpush1.msra.mxu0 %v106_v62 }
  0x49   :  { %299 = vmatprep.subr.mxu0 %v105_v63 }
  0x4a   :  { %300 = vmatpush1.msra.mxu0 %v104_v0 }
  0x4b   :  { %301 = vmatprep.subr.mxu0 %v103_v1 }
  0x4c   :  { %302 = vmatpush1.msra.mxu0 %v102_v8 }
  0x4d   :  { %303 = vmatprep.subr.mxu0 %v101_v9 }
  0x4e   :  { %304 = vmatpush1.msra.mxu0 %v100_v10 }
  0x4f   :  { %305 = vmatprep.subr.mxu0 %v99_v11 }
  0x50   :  { %306 = vmatpush1.msra.mxu0 %v98_v12 }
  0x51   :  { %307 = vmatprep.subr.mxu0 %v97_v13 }
  0x52   :  { %308 = vmatpush1.msra.mxu0 %v96_v14 }
  0x53   :  { %309 = vmatprep.subr.mxu0 %v95_v15 }
  0x54   :  { %310 = vmatpush1.msra.mxu0 %v94_v16 }
  0x55   :  { %311 = vmatprep.subr.mxu0 %v93_v17 }
  0x56   :  { %312 = vmatpush1.msra.mxu0 %v92_v18 }
  0x57   :  { %313 = vmatprep.subr.mxu0 %v91_v19 }
  0x58   :  { %314 = vmatpush1.msra.mxu0 %v90_v20 }
  0x59   :  { %315 = vmatprep.subr.mxu0 %v89_v21 }
  0x5a   :  { %316 = vmatpush1.msra.mxu0 %v88_v22 }
  0x5b   :  { %317 = vmatprep.subr.mxu0 %v87_v23 }
  0x5c   :  { %318 = vmatpush1.msra.mxu0 %v86_v24 }
  0xfb   :  { %v420_v2 = vpop.f32.mrf.mxu0 }
  0xfd   :  { %v421_v4 = vpop.f32.mrf.mxu0 }
  0xfe   :  { %v422_v5 = vadd.f32 %v421_v4, %v420_v2 }
 0x100   :  { %v201_v6 = vadd.f32 %v422_v5, %v118_v3 }
 0x102   :  { %482 = vtanh.f32 %v201_v6 }
 0x10f   :  { %v483_v7 = vpop.eup %482 }
 0x110   :  { %473 = vmatmul.mubr.f32.vlgmr.msra.gmra.mxu1 %v483_v7 }
 0x1d0   :  { %v271_v26 = vpop.f32.mrf.mxu1 }
 0x1d1   :  { %v272_v27 = vadd.f32 %v271_v26, %v119_v25 }
 0x1d2   :  { %v474_v28 = vpop.f32.mrf.mxu1 }
 0x1d3   :  { %484 = vtanh.f32 %v272_v27 }
 0x1e0   :  { %v485_v29 = vpop.eup %484 }
 0x1e1   :  { %352 = vmatmul.mubr.f32.vlgmr.msra.gmra.mxu0 %v485_v29 }
 0x2a1   :  { %v353_v37 = vpop.f32.mrf.mxu0 }
 0x2a2   :  { %v354_v39 = vadd.f32 %v353_v37, %v280_v35 }
 0x2a3   :  { %v355_v38 = vpop.f32.mrf.mxu0 }
 0x2a4   :  { %v356_v40 = vadd.f32 %v355_v38, %v284_v36 }
 0x2a6   :  { %v360_v41 = vcombine.low %v354_v39, %v356_v40 }
 0x2a8   :  { %387 = vst.sshfl [vmem:[#allocation7] sm:$0x33 pattern:$0x76325410] %v360_v41 }
 0x2a9   :  { %537 = shalt.err (!%p534_p0)
}
 0x2aa   :  { %379 = dma.vmem_to_hbm [thread:$0]  %s377_s1, 64, %s603_s2, [#allocation4]  }
 0x2ab   :  { %550 = dma.done.wait [#allocation4], 64  }
 0x2ac   :  { %551 = vsyncadd [#allocation4], 4294967232 }
 0x2ad   :  { %383 = vsyncpa [#allocation3], 1 }
 0x2ae   :  { %384 = vsyncpa [#allocation6], 1 }
 0x2af   :  { %385 = vsyncpa [#allocation4], 1 }

</bundles_post_ra>
